<compile_context>
chip_gen: v6e
topology: v6e:2x2x1
jax: 0.10.0
libtpu: 0.0.40
codegen_flags: <defaults>
</compile_context>

<pallas_src>
import jax
import jax.numpy as jnp
from jax.experimental import pallas as pl
from jax.experimental.pallas import tpu as pltpu


def _mish_kernel(x_ref, o_ref):
    x = x_ref[...].astype(jnp.float32)
    # mish(x) = x * tanh(softplus(x)) = x * (t^2 + 2t) / (t^2 + 2t + 2), t = e^x.
    # Clamp the exp argument; for x >= 20 the ratio is already 1.0 in f32.
    t = jnp.exp(jnp.minimum(x, 20.0))          # 1 EUP op / element
    num = t * (t + 2.0)
    den = num + 2.0
    r = pl.reciprocal(den, approx=True)        # EUP vrcp (approx, ~12-bit)
    if o_ref.dtype == jnp.float32:
        # One Newton step only when f32 output precision needs it; for bf16
        # outputs approx vrcp is already exact-enough and the extra VALU work
        # would make bf16 I/O VALU-bound on v6e/v7x.
        r = r * (2.0 - den * r)
    # Form the bounded ratio (num * r <= 1) first to avoid x*num overflow.
    o_ref[...] = (x * (num * r)).astype(o_ref.dtype)


def _round_up(v, m):
    return -(-v // m) * m


def mish(x, *, target_block_bytes=4 << 20, vmem_limit_bytes=32 << 20):
    """Mish on an arbitrary-shaped array (matches torch x*tanh(softplus(x)))."""
    orig_shape = x.shape
    orig_dtype = x.dtype
    n = x.size
    itemsize = jnp.dtype(orig_dtype).itemsize

    # ---- lane-dense 2D view (reshape only: no HBM copy in the common case) ----
    lanes = 128
    for cand in (2048, 1024, 512, 256, 128):
        if n % cand == 0:
            lanes = cand
            break

    x_flat = jnp.reshape(x, (-1,))
    n_pad = n
    if n % lanes != 0:
        # TODO(synk): replace pad + trailing slice with in-kernel ragged-tail
        # masking; this fallback costs extra HBM passes but is never hit by
        # conv-style activation shapes.
        n_pad = pl.cdiv(n, lanes) * lanes
        x_flat = jnp.pad(x_flat, (0, n_pad - n))

    rows = n_pad // lanes
    x2d = jnp.reshape(x_flat, (rows, lanes))
    total_bytes = rows * lanes * itemsize

    # ---- block-size selection --------------------------------------------
    # * tiles large enough to amortize per-step overhead,
    # * double-buffered in+out (4x block) fits VMEM on every generation,
    # * >= 8 (even) grid steps for non-tiny inputs so the pipeline overlaps
    #   and v7x can shard the "parallel" axis across both TensorCores.
    sub = 16 if itemsize < 4 else 8            # sublane multiple (bf16 packs 16)
    max_rows = max(sub, (target_block_bytes // (lanes * itemsize)) // sub * sub)

    if total_bytes <= (512 << 10) or rows <= sub:
        # Tiny input: overhead-dominated anyway; one (or few) blocks is fine.
        tile_rows = min(rows, max_rows)
        if tile_rows != rows and tile_rows % sub != 0:
            tile_rows = rows                    # keep block_shape legal
    else:
        min_steps = 8
        desired_steps = max(min_steps, pl.cdiv(rows, max_rows))
        if desired_steps % 2:
            desired_steps += 1
        tile_rows = _round_up(pl.cdiv(rows, desired_steps), sub)
        tile_rows = max(sub, min(tile_rows, max_rows, _round_up(rows, sub)))
        # Nudge toward an even number of grid steps (ideal for v7x megacore).
        if pl.cdiv(rows, tile_rows) % 2:
            for cand in range(tile_rows - sub, max(sub - 1, tile_rows - 16 * sub), -sub):
                if cand >= sub and pl.cdiv(rows, cand) % 2 == 0:
                    tile_rows = cand
                    break
        if tile_rows > rows:
            tile_rows = rows

    grid = (pl.cdiv(rows, tile_rows),)

    out2d = pl.pallas_call(
        _mish_kernel,
        out_shape=jax.ShapeDtypeStruct((rows, lanes), orig_dtype),
        grid_spec=pltpu.PrefetchScalarGridSpec(
            num_scalar_prefetch=0,
            grid=grid,
            in_specs=[pl.BlockSpec((tile_rows, lanes), lambda i: (i, 0))],
            out_specs=pl.BlockSpec((tile_rows, lanes), lambda i: (i, 0)),
        ),
        compiler_params=pltpu.CompilerParams(
            dimension_semantics=("parallel",),
            vmem_limit_bytes=vmem_limit_bytes,
        ),
    )(x2d)

    if n_pad != n:
        out_flat = jnp.reshape(out2d, (-1,))[:n]
        return jnp.reshape(out_flat, orig_shape)
    return jnp.reshape(out2d, orig_shape)


def _mish_ref(x):
    xf = x.astype(jnp.float32)
    sp = jnp.maximum(xf, 0.0) + jnp.log1p(jnp.exp(-jnp.abs(xf)))
    return (xf * jnp.tanh(sp)).astype(x.dtype)


if __name__ == "__main__":
    key = jax.random.PRNGKey(0)
    # NCHW, matching PyTorch conv-style inputs.
    x = jax.random.normal(key, (2, 4, 16, 16), dtype=jnp.float32) * 3.0

    y = jax.block_until_ready(mish(x))
    y_ref = _mish_ref(x)
    assert y.shape == x.shape and y.dtype == x.dtype
    err = float(jnp.max(jnp.abs(y - y_ref)))
    assert err < 1e-4, f"f32 max abs err {err}"

    # bf16 path (exercises the Newton-skip branch); tolerance at bf16 precision.
    xb = x.astype(jnp.bfloat16)
    yb = jax.block_until_ready(mish(xb))
    yb_ref = _mish_ref(xb)
    assert yb.shape == xb.shape and yb.dtype == xb.dtype
    errb = float(jnp.max(jnp.abs(yb.astype(jnp.float32) - yb_ref.astype(jnp.float32))))
    assert errb < 8e-2, f"bf16 max abs err {errb}"

    print("KERNEL_OK")
</pallas_src>

<mosaic_0001>
module attributes {stable_mosaic.version = 11 : i64} {
  func.func @_mish_kernel(%arg0: i32, %arg1: memref<1x2048xf32, #tpu.memory_space<vmem>>, %arg2: memref<1x2048xf32, #tpu.memory_space<vmem>>) attributes {dimension_semantics = [#tpu.dimension_semantics<parallel>], iteration_bounds = array<i64: 1>, scalar_prefetch = 0 : i64, scratch_operands = 0 : i64, tpu.core_type = #tpu.core_type<tc>, window_params = [{transform_indices = @transform_0, window_bounds = array<i64: 1, 2048>}, {transform_indices = @transform_1, window_bounds = array<i64: 1, 2048>}]} {
    %c0 = arith.constant 0 : index
    %c0_0 = arith.constant 0 : index
    %0 = vector.load %arg1[%c0, %c0_0] : memref<1x2048xf32, #tpu.memory_space<vmem>>, vector<1x2048xf32>
    %cst = arith.constant 2.000000e+01 : f32
    %1 = vector.broadcast %cst : f32 to vector<1x2048xf32>
    %2 = arith.minimumf %0, %1 : vector<1x2048xf32>
    %3 = math.exp %2 : vector<1x2048xf32>
    %cst_1 = arith.constant 2.000000e+00 : f32
    %4 = vector.broadcast %cst_1 : f32 to vector<1x2048xf32>
    %5 = arith.addf %3, %4 : vector<1x2048xf32>
    %6 = arith.mulf %3, %5 : vector<1x2048xf32>
    %cst_2 = arith.constant 2.000000e+00 : f32
    %7 = vector.broadcast %cst_2 : f32 to vector<1x2048xf32>
    %8 = arith.addf %6, %7 : vector<1x2048xf32>
    %9 = tpu.reciprocal %8 {approx = true} : vector<1x2048xf32> -> vector<1x2048xf32>
    %10 = arith.mulf %8, %9 : vector<1x2048xf32>
    %cst_3 = arith.constant 2.000000e+00 : f32
    %11 = vector.broadcast %cst_3 : f32 to vector<1x2048xf32>
    %12 = arith.subf %11, %10 : vector<1x2048xf32>
    %13 = arith.mulf %9, %12 : vector<1x2048xf32>
    %14 = arith.mulf %6, %13 : vector<1x2048xf32>
    %15 = arith.mulf %0, %14 : vector<1x2048xf32>
    %c0_4 = arith.constant 0 : index
    %c0_5 = arith.constant 0 : index
    %16 = vector.load %arg2[%c0_4, %c0_5] : memref<1x2048xf32, #tpu.memory_space<vmem>>, vector<1x2048xf32>
    tpu.vector_store %arg2[%c0_4, %c0_5], %15 {strides = array<i32>} : memref<1x2048xf32, #tpu.memory_space<vmem>>, vector<1x2048xf32>,
    return
  }
  func.func @transform_0(%arg0: i32) -> (i32, i32) {
    %c0_i32 = arith.constant 0 : i32
    %c0_i32_0 = arith.constant 0 : i32
    return %arg0, %c0_i32 : i32, i32
  }
  func.func @transform_1(%arg0: i32) -> (i32, i32) {
    %c0_i32 = arith.constant 0 : i32
    %c0_i32_0 = arith.constant 0 : i32
    return %arg0, %c0_i32 : i32, i32
  }
}

</mosaic_0001>

<bundles_post_ra>
// kernel: tpu_custom_call.1
= control target key start
LH: loop header
LB: loop body
LE: loop exit
PB: predicated region body
PF: predicated region fallthrough
CT: control target
= control target key end

     0   :  { %6 = vsyncpa [#allocation3], 0  ;;  %s136_s0 = inlined_call_operand.hbm [shape: f32[1,2048], index: 0, kind: input, shape index: {}]   ;;  %s137_s1 = inlined_call_operand.hbm [shape: f32[1,2048], index: 1, kind: output, shape index: {}]  }
   0x1   :  { %7 = vsyncpa [#allocation4], 0  ;;  %s118_s6 = smov [#allocation2]  }
   0x2   :  { %s14_s7 = sshll.u32 %s118_s6, 4  ;;  %s15_s7 = int_to_ptr.vmem [resolvable:$true] %s14_s7 }
   0x3   :  { %s82_s8 = scalar_lea.vmem %s15_s7, 256  ;;  %p87_p1 = scmp.lt.s32.totalorder %s15_s7, %s15_s7 }
   0x4   :  { %p83_p0 = scmp.ne.s32.totalorder %s15_s7, %s82_s8  ;;  %p88_p2 = scmp.lt.s32.totalorder %s82_s8, %s82_s8 }
   0x6   :  { %p89_p3 = por %p88_p2, %p87_p1 }
   0x8   :  { %p90_p4 = pnand %p89_p3, %p83_p0 }
   0xa   :  { %93 = shalt.err (!%p90_p4)
}
   0xb   :  { %17 = dma.hbm_to_vmem [thread:$0]  %s136_s0, 256, %s15_s7, [#allocation3]  }
   0xc   :  { %114 = dma.done.wait [#allocation3], 256  }
   0xd   :  { %115 = vsyncadd [#allocation3], 4294967040  ;;  %v21_v0 = vld [vmem:[#allocation2] sm:$0xff]  ;;  %v22_v1 = vld [vmem:[#allocation2 + $0x8] sm:$0xff]  ;;  %s119_s0 = smov [#allocation5]  }
   0xe   :  { %v23_v2 = vmin.f32 %v21_v0, 20.0  ;;  %v24_v3 = vmin.f32 %v22_v1, 20.0  ;;  %s55_s11 = sshll.u32 %s119_s0, 4  ;;  %s56_s11 = int_to_ptr.vmem [resolvable:$true] %s55_s11 }
   0xf   :  { %s94_s12 = scalar_lea.vmem %s56_s11, 256  ;;  %p99_p6 = scmp.lt.s32.totalorder %s56_s11, %s56_s11 }
  0x10   :  { %v25_v4 = vmul.f32 1.442695, %v23_v2  ;;  %v27_v5 = vmul.f32 1.442695, %v24_v3  ;;  %p95_p5 = scmp.ne.s32.totalorder %s56_s11, %s94_s12  ;;  %p100_p7 = scmp.lt.s32.totalorder %s94_s12, %s94_s12 }
  0x12   :  { %66 = vpow2.f32 %v25_v4  ;;  %p101_p8 = por %p100_p7, %p99_p6 }
  0x13   :  { %68 = vpow2.f32 %v27_v5 }
  0x14   :  { %p102_p9 = pnand %p101_p8, %p95_p5 }
  0x1f   :  { %v67_v6 = vpop.eup %66 }
  0x20   :  { %v69_v7 = vpop.eup %68  ;;  %v29_v8 = vadd.f32 2.0, %v67_v6 }
  0x21   :  { %v30_v9 = vadd.f32 2.0, %v69_v7 }
  0x22   :  { %v31_v10 = vmul.f32 %v67_v6, %v29_v8 }
  0x23   :  { %v32_v11 = vmul.f32 %v69_v7, %v30_v9 }
  0x24   :  { %v33_v12 = vadd.f32 2.0, %v31_v10 }
  0x25   :  { %v34_v13 = vadd.f32 2.0, %v32_v11 }
  0x26   :  { %70 = vrcp.f32 %v33_v12 }
  0x27   :  { %72 = vrcp.f32 %v34_v13 }
  0x33   :  { %v71_v14 = vpop.eup %70 }
  0x34   :  { %v73_v15 = vpop.eup %72  ;;  %v37_v16 = vmul.f32 %v71_v14, %v33_v12 }
  0x35   :  { %v38_v17 = vmul.f32 %v73_v15, %v34_v13 }
  0x36   :  { %v39_v18 = vsub.f32 2.0, %v37_v16 }
  0x37   :  { %v40_v19 = vsub.f32 2.0, %v38_v17 }
  0x38   :  { %v41_v20 = vmul.f32 %v71_v14, %v39_v18 }
  0x39   :  { %v42_v21 = vmul.f32 %v73_v15, %v40_v19 }
  0x3a   :  { %v43_v22 = vmul.f32 %v41_v20, %v31_v10 }
  0x3b   :  { %v44_v23 = vmul.f32 %v42_v21, %v32_v11 }
  0x3c   :  { %v45_v24 = vmul.f32 %v43_v22, %v21_v0 }
  0x3d   :  { %v46_v25 = vmul.f32 %v44_v23, %v22_v1 }
  0x3e   :  { %47 = vst [vmem:[#allocation5] sm:$0xff] %v45_v24 }
  0x3f   :  { %48 = vst [vmem:[#allocation5 + $0x8] sm:$0xff] %v46_v25 }
  0x40   :  { %105 = shalt.err (!%p102_p9)
}
  0x41   :  { %58 = dma.vmem_to_hbm [thread:$0]  %s56_s11, 256, %s137_s1, [#allocation4]  }
  0x42   :  { %116 = dma.done.wait [#allocation4], 256  }
  0x43   :  { %117 = vsyncadd [#allocation4], 4294967040 }
  0x44   :  { %62 = vsyncpa [#allocation3], 1 }
  0x45   :  { %63 = vsyncpa [#allocation4], 1 }

</bundles_post_ra>
